<compile_context>
chip_gen: v7x
topology: tpu7x:2x2x1
jax: 0.10.0
libtpu: 0.0.40
codegen_flags: <defaults>
</compile_context>

<pallas_src>
import jax
import jax.numpy as jnp
import numpy as np
from jax.experimental import pallas as pl
from jax.experimental.pallas import tpu as pltpu

LANE = 128     # TPU vreg lane width
SUBLANE = 8    # TPU vreg sublane count


def _round_up(x, m):
    return (x + m - 1) // m * m


def _policy_mean_kernel(x_ref, w1_ref, b1_ref, w2_ref, b2_ref, w3_ref, b3_ref,
                        mean_ref):
    x = x_ref[...]                                                    # (TB, S)
    h1 = jnp.dot(x, w1_ref[...], preferred_element_type=jnp.float32) + b1_ref[...]
    h1 = jnp.maximum(h1, 0.0)                                         # ReLU
    h2 = jnp.dot(h1, w2_ref[...], preferred_element_type=jnp.float32) + b2_ref[...]
    h2 = jnp.maximum(h2, 0.0)                                         # ReLU
    mean_ref[...] = (jnp.dot(h2, w3_ref[...], preferred_element_type=jnp.float32)
                     + b3_ref[...])                                   # (TB, A_pad)


def policy_forward(x, params, *, tile_b=512):
    """Policy MLP forward pass (mean via Pallas, std in the wrapper).

    Args:
      x: (batch, state_dim) float32
      params: dict with w1 (S,H), b1 (1,H), w2 (H,H), b2 (1,H),
              w3 (H,A), b3 (1,A), log_std (1,A)
    Returns:
      (mean, std): both (batch, action_dim) float32
    """
    B, S = x.shape
    H = params["w1"].shape[1]
    A = params["w3"].shape[1]

    # Lane-dense output: pad the action dim up to a full 128-lane row. The
    # padded w3/b3 columns are zero, so padded output lanes are exactly zero
    # and are sliced off below.
    A_pad = _round_up(max(A, LANE), LANE)
    w3p = jnp.pad(params["w3"], ((0, 0), (0, A_pad - A)))
    b3p = jnp.pad(params["b3"], ((0, 0), (0, A_pad - A)))

    # Batch tiling: sublane-aligned tile, batch padded to a whole number of tiles.
    TILE_B = min(tile_b, _round_up(B, SUBLANE))
    B_pad = _round_up(B, TILE_B)
    x_p = jnp.pad(x, ((0, B_pad - B), (0, 0))) if B_pad != B else x

    grid = (B_pad // TILE_B,)
    const = lambda i: (0, 0)   # weights: same block every step -> VMEM-resident

    mean_p = pl.pallas_call(
        _policy_mean_kernel,
        out_shape=jax.ShapeDtypeStruct((B_pad, A_pad), jnp.float32),
        grid=grid,
        in_specs=[
            pl.BlockSpec((TILE_B, S), lambda i: (i, 0)),   # x tile (pipelined)
            pl.BlockSpec((S, H), const),                   # w1
            pl.BlockSpec((1, H), const),                   # b1
            pl.BlockSpec((H, H), const),                   # w2
            pl.BlockSpec((1, H), const),                   # b2
            pl.BlockSpec((H, A_pad), const),               # w3 (lane-padded)
            pl.BlockSpec((1, A_pad), const),               # b3 (lane-padded)
        ],
        out_specs=pl.BlockSpec((TILE_B, A_pad), lambda i: (i, 0)),
        compiler_params=pltpu.CompilerParams(
            dimension_semantics=("parallel",)),            # megacore on v7x
    )(x_p, params["w1"], params["b1"], params["w2"], params["b2"], w3p, b3p)

    mean = mean_p[:B, :A]
    # std = exp(log_std) is independent of x: computed outside the kernel,
    # broadcast like torch.distributions.Normal would.
    std = jnp.broadcast_to(jnp.exp(params["log_std"]), mean.shape)
    return mean, std


def init_params(key, state_dim, action_dim, hidden=64):
    """Deterministic init mimicking PyTorch nn.Linear default (U(-1/sqrt(fan_in), +))."""
    ks = jax.random.split(key, 6)

    def linear(kw, kb, fan_in, fan_out):
        bound = 1.0 / np.sqrt(fan_in)
        w = jax.random.uniform(kw, (fan_in, fan_out), jnp.float32, -bound, bound)
        b = jax.random.uniform(kb, (1, fan_out), jnp.float32, -bound, bound)
        return w, b

    w1, b1 = linear(ks[0], ks[1], state_dim, hidden)
    w2, b2 = linear(ks[2], ks[3], hidden, hidden)
    w3, b3 = linear(ks[4], ks[5], hidden, action_dim)
    log_std = jnp.zeros((1, action_dim), jnp.float32)   # nn.Parameter(torch.zeros(A))
    return dict(w1=w1, b1=b1, w2=w2, b2=b2, w3=w3, b3=b3, log_std=log_std)


def reference_forward(x, p):
    h1 = jnp.maximum(x @ p["w1"] + p["b1"], 0.0)
    h2 = jnp.maximum(h1 @ p["w2"] + p["b2"], 0.0)
    mean = h2 @ p["w3"] + p["b3"]
    std = jnp.broadcast_to(jnp.exp(p["log_std"]), mean.shape)
    return mean, std


if __name__ == "__main__":
    key = jax.random.PRNGKey(0)
    k_x, k_p, k_x2 = jax.random.split(key, 3)

    state_dim, action_dim, batch = 4, 2, 8     # CartPole-like state, small batch
    params = init_params(k_p, state_dim, action_dim)

    # Small batch (single grid step).
    x = jax.random.normal(k_x, (batch, state_dim), jnp.float32)
    mean, std = policy_forward(x, params)
    jax.block_until_ready((mean, std))
    ref_mean, ref_std = reference_forward(x, params)
    np.testing.assert_allclose(np.asarray(mean), np.asarray(ref_mean), rtol=1e-5, atol=1e-5)
    np.testing.assert_allclose(np.asarray(std), np.asarray(ref_std), rtol=1e-6, atol=1e-6)

    # Larger, non-tile-aligned batch to exercise multi-step grid + batch padding.
    x2 = jax.random.normal(k_x2, (700, state_dim), jnp.float32)
    mean2, std2 = policy_forward(x2, params, tile_b=256)
    jax.block_until_ready((mean2, std2))
    ref_mean2, ref_std2 = reference_forward(x2, params)
    np.testing.assert_allclose(np.asarray(mean2), np.asarray(ref_mean2), rtol=1e-5, atol=1e-5)
    np.testing.assert_allclose(np.asarray(std2), np.asarray(ref_std2), rtol=1e-6, atol=1e-6)

    print("KERNEL_OK")
</pallas_src>

<mosaic_0001>
module attributes {stable_mosaic.version = 11 : i64} {
  func.func @_policy_mean_kernel(%arg0: i32, %arg1: memref<8x4xf32, #tpu.memory_space<vmem>>, %arg2: memref<4x64xf32, #tpu.memory_space<vmem>>, %arg3: memref<1x64xf32, #tpu.memory_space<vmem>>, %arg4: memref<64x64xf32, #tpu.memory_space<vmem>>, %arg5: memref<1x64xf32, #tpu.memory_space<vmem>>, %arg6: memref<64x128xf32, #tpu.memory_space<vmem>>, %arg7: memref<1x128xf32, #tpu.memory_space<vmem>>, %arg8: memref<8x128xf32, #tpu.memory_space<vmem>>) attributes {dimension_semantics = [#tpu.dimension_semantics<parallel>], iteration_bounds = array<i64: 1>, scalar_prefetch = 0 : i64, scratch_operands = 0 : i64, tpu.core_type = #tpu.core_type<tc>, window_params = [{transform_indices = @transform_0, window_bounds = array<i64: 8, 4>}, {pipeline_mode = #tpu.pipeline_mode<synchronous>, transform_indices = @transform_1, window_bounds = array<i64: 4, 64>}, {pipeline_mode = #tpu.pipeline_mode<synchronous>, transform_indices = @transform_2, window_bounds = array<i64: 1, 64>}, {pipeline_mode = #tpu.pipeline_mode<synchronous>, transform_indices = @transform_3, window_bounds = array<i64: 64, 64>}, {pipeline_mode = #tpu.pipeline_mode<synchronous>, transform_indices = @transform_4, window_bounds = array<i64: 1, 64>}, {pipeline_mode = #tpu.pipeline_mode<synchronous>, transform_indices = @transform_5, window_bounds = array<i64: 64, 128>}, {pipeline_mode = #tpu.pipeline_mode<synchronous>, transform_indices = @transform_6, window_bounds = array<i64: 1, 128>}, {transform_indices = @transform_7, window_bounds = array<i64: 8, 128>}]} {
    %c0 = arith.constant 0 : index
    %c0_0 = arith.constant 0 : index
    %0 = vector.load %arg1[%c0, %c0_0] : memref<8x4xf32, #tpu.memory_space<vmem>>, vector<8x4xf32>
    %c0_1 = arith.constant 0 : index
    %c0_2 = arith.constant 0 : index
    %1 = vector.load %arg2[%c0_1, %c0_2] : memref<4x64xf32, #tpu.memory_space<vmem>>, vector<4x64xf32>
    %cst = arith.constant dense<0.000000e+00> : vector<8x64xf32>
    %2 = tpu.matmul %0, %1, %cst {dimension_numbers = #tpu.dot_dimension_numbers<[1], [0], [0], [1], [0, 0, 1, 1], [], []>} : vector<8x4xf32>, vector<4x64xf32>, vector<8x64xf32> -> vector<8x64xf32>
    %c0_3 = arith.constant 0 : index
    %c0_4 = arith.constant 0 : index
    %3 = vector.load %arg3[%c0_3, %c0_4] : memref<1x64xf32, #tpu.memory_space<vmem>>, vector<1x64xf32>
    %4 = vector.broadcast %3 : vector<1x64xf32> to vector<8x64xf32>
    %5 = arith.addf %2, %4 : vector<8x64xf32>
    %cst_5 = arith.constant 0.000000e+00 : f32
    %6 = vector.broadcast %cst_5 : f32 to vector<8x64xf32>
    %7 = arith.maximumf %5, %6 : vector<8x64xf32>
    %c0_6 = arith.constant 0 : index
    %c0_7 = arith.constant 0 : index
    %8 = vector.load %arg4[%c0_6, %c0_7] : memref<64x64xf32, #tpu.memory_space<vmem>>, vector<64x64xf32>
    %cst_8 = arith.constant dense<0.000000e+00> : vector<8x64xf32>
    %9 = tpu.matmul %7, %8, %cst_8 {dimension_numbers = #tpu.dot_dimension_numbers<[1], [0], [0], [1], [0, 0, 1, 1], [], []>} : vector<8x64xf32>, vector<64x64xf32>, vector<8x64xf32> -> vector<8x64xf32>
    %c0_9 = arith.constant 0 : index
    %c0_10 = arith.constant 0 : index
    %10 = vector.load %arg5[%c0_9, %c0_10] : memref<1x64xf32, #tpu.memory_space<vmem>>, vector<1x64xf32>
    %11 = vector.broadcast %10 : vector<1x64xf32> to vector<8x64xf32>
    %12 = arith.addf %9, %11 : vector<8x64xf32>
    %cst_11 = arith.constant 0.000000e+00 : f32
    %13 = vector.broadcast %cst_11 : f32 to vector<8x64xf32>
    %14 = arith.maximumf %12, %13 : vector<8x64xf32>
    %c0_12 = arith.constant 0 : index
    %c0_13 = arith.constant 0 : index
    %15 = vector.load %arg6[%c0_12, %c0_13] : memref<64x128xf32, #tpu.memory_space<vmem>>, vector<64x128xf32>
    %cst_14 = arith.constant dense<0.000000e+00> : vector<8x128xf32>
    %16 = tpu.matmul %14, %15, %cst_14 {dimension_numbers = #tpu.dot_dimension_numbers<[1], [0], [0], [1], [0, 0, 1, 1], [], []>} : vector<8x64xf32>, vector<64x128xf32>, vector<8x128xf32> -> vector<8x128xf32>
    %c0_15 = arith.constant 0 : index
    %c0_16 = arith.constant 0 : index
    %17 = vector.load %arg7[%c0_15, %c0_16] : memref<1x128xf32, #tpu.memory_space<vmem>>, vector<1x128xf32>
    %18 = vector.broadcast %17 : vector<1x128xf32> to vector<8x128xf32>
    %19 = arith.addf %16, %18 : vector<8x128xf32>
    %c0_17 = arith.constant 0 : index
    %c0_18 = arith.constant 0 : index
    %20 = vector.load %arg8[%c0_17, %c0_18] : memref<8x128xf32, #tpu.memory_space<vmem>>, vector<8x128xf32>
    tpu.vector_store %arg8[%c0_17, %c0_18], %19 {strides = array<i32>} : memref<8x128xf32, #tpu.memory_space<vmem>>, vector<8x128xf32>,
    return
  }
  func.func @transform_0(%arg0: i32) -> (i32, i32) {
    %c0_i32 = arith.constant 0 : i32
    %c0_i32_0 = arith.constant 0 : i32
    return %arg0, %c0_i32 : i32, i32
  }
  func.func @transform_1(%arg0: i32) -> (i32, i32) {
    %c0_i32 = arith.constant 0 : i32
    %c0_i32_0 = arith.constant 0 : i32
    %c0_i32_1 = arith.constant 0 : i32
    return %c0_i32, %c0_i32_0 : i32, i32
  }
  func.func @transform_2(%arg0: i32) -> (i32, i32) {
    %c0_i32 = arith.constant 0 : i32
    %c0_i32_0 = arith.constant 0 : i32
    %c0_i32_1 = arith.constant 0 : i32
    return %c0_i32, %c0_i32_0 : i32, i32
  }
  func.func @transform_3(%arg0: i32) -> (i32, i32) {
    %c0_i32 = arith.constant 0 : i32
    %c0_i32_0 = arith.constant 0 : i32
    %c0_i32_1 = arith.constant 0 : i32
    return %c0_i32, %c0_i32_0 : i32, i32
  }
  func.func @transform_4(%arg0: i32) -> (i32, i32) {
    %c0_i32 = arith.constant 0 : i32
    %c0_i32_0 = arith.constant 0 : i32
    %c0_i32_1 = arith.constant 0 : i32
    return %c0_i32, %c0_i32_0 : i32, i32
  }
  func.func @transform_5(%arg0: i32) -> (i32, i32) {
    %c0_i32 = arith.constant 0 : i32
    %c0_i32_0 = arith.constant 0 : i32
    %c0_i32_1 = arith.constant 0 : i32
    return %c0_i32, %c0_i32_0 : i32, i32
  }
  func.func @transform_6(%arg0: i32) -> (i32, i32) {
    %c0_i32 = arith.constant 0 : i32
    %c0_i32_0 = arith.constant 0 : i32
    %c0_i32_1 = arith.constant 0 : i32
    return %c0_i32, %c0_i32_0 : i32, i32
  }
  func.func @transform_7(%arg0: i32) -> (i32, i32) {
    %c0_i32 = arith.constant 0 : i32
    %c0_i32_0 = arith.constant 0 : i32
    return %arg0, %c0_i32 : i32, i32
  }
}

</mosaic_0001>

<bundles_post_ra>
// kernel: tpu_custom_call.1
= control target key start
LH: loop header
LB: loop body
LE: loop exit
PB: predicated region body
PF: predicated region fallthrough
CT: control target
= control target key end

     0   :  { %12 = vsyncpa [#allocation3], 0  ;;  %s614_s0 = inlined_call_operand.vmem [shape: f32[8,4], index: 0, kind: input, shape index: {}]   ;;  %s615_s1 = inlined_call_operand.vmem [shape: f32[4,64], index: 1, kind: input, shape index: {}]   ;;  %s616_s2 = inlined_call_operand.vmem [shape: f32[1,64], index: 2, kind: input, shape index: {}]   ;;  %s617_s3 = inlined_call_operand.hbm [shape: f32[64,64], index: 3, kind: input, shape index: {}]   ;;  %s618_s4 = inlined_call_operand.vmem [shape: f32[1,64], index: 4, kind: input, shape index: {}]   ;;  %s619_s5 = inlined_call_operand.hbm [shape: f32[64,128], index: 5, kind: input, shape index: {}]   ;;  %s620_s6 = inlined_call_operand.vmem [shape: f32[1,128], index: 6, kind: input, shape index: {}]   ;;  %s621_s7 = inlined_call_operand.hbm [shape: f32[8,128], index: 7, kind: output, shape index: {}]  }
   0x1   :  { %13 = vsyncpa [#allocation6], 0 }
   0x2   :  { %14 = vsyncpa [#allocation4], 0  ;;  %s512_s24 = smov [#allocation2]   ;;  %s440_s28 = scalar_lea.hbm %s617_s3, 1024 }
   0x3   :  { %s26_s25 = sshll.u32 %s512_s24, 4  ;;  %p441_p0 = scmp.ne.s32.totalorder %s617_s3, %s440_s28  ;;  %s27_s25 = int_to_ptr.vmem [resolvable:$true] %s26_s25 }
   0x4   :  { %p444_p1 = scmp.lt.u32.totalorder %s440_s28, %s617_s3 }
   0x6   :  { %p446_p2 = pnand %p444_p1, %p441_p0 }
   0x8   :  { %449 = shalt.err (!%p446_p2)
}
   0x9   :  { %s450_s10 = scalar_lea.vmem %s27_s25, 1024  ;;  %p455_p4 = scmp.lt.s32.totalorder %s27_s25, %s27_s25 }
   0xa   :  { %p451_p3 = scmp.ne.s32.totalorder %s27_s25, %s450_s10  ;;  %p456_p5 = scmp.lt.s32.totalorder %s450_s10, %s450_s10 }
   0xc   :  { %p457_p6 = por %p456_p5, %p455_p4 }
   0xe   :  { %p458_p7 = pnand %p457_p6, %p451_p3 }
  0x10   :  { %461 = shalt.err (!%p458_p7)
}
  0x11   :  { %s513_s11 = smov 128   ;;  %s514_s12 = smov 8  }
  0x12   :  { %32 = dma.hbm_to_vmem [thread:$0]  %s617_s3, 1024, %s27_s25, [#allocation3], %s513_s11, %s513_s11, %s514_s12  }
  0x13   :  { %s515_s15 = smov [#allocation5]   ;;  %s462_s19 = scalar_lea.hbm %s619_s5, 1024 }
  0x14   :  { %s40_s16 = sshll.u32 %s515_s15, 4  ;;  %p463_p8 = scmp.ne.s32.totalorder %s619_s5, %s462_s19  ;;  %s41_s16 = int_to_ptr.vmem [resolvable:$true] %s40_s16 }
  0x15   :  { %p466_p9 = scmp.lt.u32.totalorder %s462_s19, %s619_s5 }
  0x17   :  { %p468_p10 = pnand %p466_p9, %p463_p8 }
  0x19   :  { %471 = shalt.err (!%p468_p10)
}
  0x1a   :  { %s472_s24 = scalar_lea.vmem %s41_s16, 1024  ;;  %p477_p12 = scmp.lt.s32.totalorder %s41_s16, %s41_s16 }
  0x1b   :  { %p473_p11 = scmp.ne.s32.totalorder %s41_s16, %s472_s24  ;;  %p478_p13 = scmp.lt.s32.totalorder %s472_s24, %s472_s24 }
  0x1d   :  { %p479_p0 = por %p478_p13, %p477_p12 }
  0x1f   :  { %p480_p1 = pnand %p479_p0, %p473_p11 }
  0x21   :  { %483 = shalt.err (!%p480_p1)
}
  0x22   :  { %46 = dma.hbm_to_vmem [thread:$0]  %s619_s5, 1024, %s41_s16, [#allocation6], %s513_s11, %s513_s11, %s514_s12  }
  0x23   :  { %506 = dma.done.wait [#allocation3], 1024  }
  0x24   :  { %507 = vsyncadd [#allocation3], 4294966272 }
  0x25   :  { %508 = dma.done.wait [#allocation6], 1024  }
  0x26   :  { %509 = vsyncadd [#allocation6], 4294966272  ;;  %v516_v0 = vmov 0.0   ;;  %vm517_vm0 = vmmov 0   ;;  %v518_v1 = vmov 0.0|0.0   ;;  %vm68_vm1 = vcmask 1043456  }
  0x27   :  { %365 = vmatprep.subr.mxu0 %v516_v0  ;;  %367 = vmatprep.mubr.msk.f32.mxu0 %vm517_vm0, %v516_v0  ;;  %vm64_vm2 = vcmask 31744   ;;  %v56_v2 = vld [vmem:[%s615_s1] sm:$0xf]  ;;  %v144_v5 = vld [vmem:[#allocation2 + $0x8] sm:$0xff]  ;;  %v145_v6 = vld [vmem:[#allocation2 + $0x10] sm:$0xff]  ;;  %vm158_vm3 = vcmask 523264  }
  0x28   :  { %408 = vmatprep.subr.bf16.mxu1 %v518_v1  ;;  %386 = vmatprep.mubr.msk.f32.mxu1 %vm517_vm0, %v516_v0  ;;  %v55_v3 = vld [vmem:[%s614_s0] sm:$0xff]  ;;  %v146_v7 = vld [vmem:[#allocation2 + $0x18] sm:$0xff]  ;;  %v148_v11 = vld [vmem:[#allocation2 + $0x28] sm:$0xff]  ;;  %s519_s9 = smov [#allocation7]  }
  0x29   :  { %v143_v4 = vld [vmem:[#allocation2] sm:$0xff]  ;;  %366 = vmatpush3.msk.msra.mxu0 %vm68_vm1, %v56_v2  ;;  %v412_v9 = vpack.c.bf16 %v146_v7, %v145_v6  ;;  %v149_v13 = vld [vmem:[#allocation2 + $0x30] sm:$0xff]  ;;  %v150_v14 = vld [vmem:[#allocation2 + $0x38] sm:$0xff]  ;;  %s328_s10 = sshll.u32 %s519_s9, 4  ;;  %s329_s10 = int_to_ptr.vmem [resolvable:$true] %s328_s10 }
  0x2a   :  { %368 = vmatmul.mubr.msk.f32.vlgmr.msra.gmra.mrb[0].mxu0 %vm64_vm2, %v55_v3  ;;  %v409_v8 = vpack.c.bf16 %v144_v5, %v143_v4  ;;  %420 = vmatprep.subr.bf16.mxu0 %v518_v1  ;;  %v147_v10 = vld [vmem:[#allocation2 + $0x20] sm:$0xff]  ;;  %v418_v15 = vpack.c.bf16 %v150_v14, %v149_v13  ;;  %v234_v17 = vld [vmem:[#allocation5 + $0x8] sm:$0xff]  ;;  %v235_v18 = vld [vmem:[#allocation5 + $0x10] sm:$0xff]  ;;  %s484_s11 = scalar_lea.vmem %s329_s10, 128  ;;  %p489_p3 = scmp.lt.s32.totalorder %s329_s10, %s329_s10 }
  0x2b   :  { %405 = vmatprep.mubr.msk.f32.mxu0 %vm517_vm0, %v516_v0  ;;  %v415_v12 = vpack.c.bf16 %v148_v11, %v147_v10  ;;  %v233_v16 = vld [vmem:[#allocation5] sm:$0xff]  ;;  %v236_v20 = vld [vmem:[#allocation5 + $0x18] sm:$0xff]  ;;  %v238_v23 = vld [vmem:[#allocation5 + $0x28] sm:$0xff]  ;;  %p485_p2 = scmp.ne.s32.totalorder %s329_s10, %s484_s11  ;;  %p490_p4 = scmp.lt.s32.totalorder %s484_s11, %s484_s11 }
  0x2c   :  { %410 = vmatpush3.bf16.msra.mxu1 %v409_v8  ;;  %v421_v19 = vpack.c.bf16 %v234_v17, %v233_v16  ;;  %v424_v21 = vpack.c.bf16 %v236_v20, %v235_v18  ;;  %v237_v22 = vld [vmem:[#allocation5 + $0x20] sm:$0xff]  ;;  %v239_v30 = vld [vmem:[#allocation5 + $0x30] sm:$0xff]  ;;  %v240_v31 = vld [vmem:[#allocation5 + $0x38] sm:$0xff] }
  0x2d   :  { %411 = vmatprep.subr.bf16.mxu1 %v518_v1  ;;  %v427_v24 = vpack.c.bf16 %v238_v23, %v237_v22  ;;  %v338_v25 = vld [vmem:[%s616_s2] ss:$0 sm:$0xff]  ;;  %v430_v32 = vpack.c.bf16 %v240_v31, %v239_v30  ;;  %p491_p5 = por %p490_p4, %p489_p3 }
  0x2e   :  { %422 = vmatpush3.bf16.msra.mxu0 %v421_v19  ;;  %v341_v33 = vld [vmem:[%s618_s4] ss:$0 sm:$0xff] }
  0x2f   :  { %423 = vmatprep.subr.bf16.mxu0 %v518_v1  ;;  %v343_v38 = vld [vmem:[%s620_s6] ss:$0 sm:$0xff]  ;;  %p492_p6 = pnand %p491_p5, %p485_p2 }
  0x30   :  { %413 = vmatpush3.bf16.msra.mxu1 %v412_v9 }
  0x31   :  { %414 = vmatprep.subr.bf16.mxu1 %v518_v1 }
  0x32   :  { %425 = vmatpush3.bf16.msra.mxu0 %v424_v21 }
  0x33   :  { %426 = vmatprep.subr.bf16.mxu0 %v518_v1 }
  0x34   :  { %416 = vmatpush3.bf16.msra.mxu1 %v415_v12 }
  0x35   :  { %417 = vmatprep.subr.bf16.mxu1 %v518_v1 }
  0x36   :  { %428 = vmatpush3.bf16.msra.mxu0 %v427_v24 }
  0x37   :  { %429 = vmatprep.subr.bf16.mxu0 %v518_v1 }
  0x38   :  { %419 = vmatpush3.bf16.msra.mxu1 %v418_v15 }
  0x3a   :  { %431 = vmatpush3.bf16.msra.mxu0 %v430_v32 }
  0xfd   :  { %v138_v26 = vpop.f32.mrb[0].mxu0 }
  0xfe   :  { %v139_v27 = vadd.f32 %v338_v25, %v138_v26  ;;  %v369_v28 = vpop.f32.mrb[1].mxu0 }
 0x100   :  { %v142_v29 = vmax.f32 %v139_v27, 0.0 }
 0x102   :  { %387 = vmatmul.mubr.msk.f32.vlgmr.msra.gmra.mrb[0].mxu1 %vm158_vm3, %v142_v29 }
 0x1d5   :  { %v228_v34 = vpop.f32.mrb[0].mxu1 }
 0x1d6   :  { %v229_v35 = vadd.f32 %v341_v33, %v228_v34  ;;  %v388_v36 = vpop.f32.mrb[1].mxu1 }
 0x1d8   :  { %v232_v37 = vmax.f32 %v229_v35, 0.0 }
 0x1da   :  { %406 = vmatmul.mubr.msk.f32.vlgmr.msra.gmra.mrb[2].mxu0 %vm158_vm3, %v232_v37 }
 0x2ad   :  { %v317_v39 = vpop.f32.mrb[2].mxu0 }
 0x2ae   :  { %v318_v40 = vadd.f32 %v343_v38, %v317_v39  ;;  %v407_v41 = vpop.f32.mrb[3].mxu0 }
 0x2b0   :  { %321 = vst [vmem:[#allocation7] sm:$0xff] %v318_v40 }
 0x2b1   :  { %495 = shalt.err (!%p492_p6)
}
 0x2b2   :  { %s496_s13 = scalar_lea.hbm %s621_s7, 128 }
 0x2b3   :  { %p497_p7 = scmp.ne.s32.totalorder %s621_s7, %s496_s13  ;;  %p500_p8 = scmp.lt.u32.totalorder %s496_s13, %s621_s7 }
 0x2b5   :  { %p502_p9 = pnand %p500_p8, %p497_p7 }
 0x2b7   :  { %505 = shalt.err (!%p502_p9)
}
 0x2b8   :  { %331 = dma.vmem_to_hbm [thread:$0]  %s329_s10, 128, %s621_s7, [#allocation4]  }
 0x2b9   :  { %510 = dma.done.wait [#allocation4], 128  }
 0x2ba   :  { %511 = vsyncadd [#allocation4], 4294967168 }
 0x2bb   :  { %335 = vsyncpa [#allocation3], 1 }
 0x2bc   :  { %336 = vsyncpa [#allocation6], 1 }
 0x2bd   :  { %337 = vsyncpa [#allocation4], 1 }

</bundles_post_ra>
